<compile_context>
chip_gen: v7x
topology: tpu7x:2x2x1
jax: 0.10.0
libtpu: 0.0.40
codegen_flags: <defaults>
</compile_context>

<pallas_src>
import functools
import math

import jax
import jax.numpy as jnp
from jax import lax
from jax.experimental import pallas as pl
from jax.experimental.pallas import tpu as pltpu


# ----------------------------------------------------------------------------
# Pass 1: fused Q/K/V projection (three 1x1 convs as one (C, 3C) matmul).
# ----------------------------------------------------------------------------
def _qkv_proj_kernel(x_ref, w_ref, b_ref, q_ref, kv_ref, *, C, mxu_dtype):
    x = x_ref[0]                                                   # (tp, C)
    if mxu_dtype is not None:
        x = x.astype(mxu_dtype)                                    # cast once/tile
    y = (jnp.dot(x, w_ref[...], preferred_element_type=jnp.float32)
         + b_ref[...])                                             # (tp, 3C) f32
    y = y.astype(q_ref.dtype)
    q_ref[0] = y[:, :C]                                            # scaled Q
    kv_ref[0] = y[:, C:]                                           # [K | V]


# ----------------------------------------------------------------------------
# Pass 2: (flash) attention + output projection + residual.
# ----------------------------------------------------------------------------
def _flash_attn_kernel(q_ref, kv_ref, xres_ref, wo_ref, bo_ref, o_ref,
                       m_scr, l_scr, acc_scr,
                       *, num_heads, head_dim, mxu_dtype, multi_kv):
    C = num_heads * head_dim
    ki = pl.program_id(2)

    q = q_ref[0]                                                   # (tq, C)
    kv = kv_ref[0]                                                 # (tk, 2C)

    if multi_kv:
        @pl.when(ki == 0)
        def _init():
            m_scr[...] = jnp.full(m_scr.shape, -jnp.inf, dtype=m_scr.dtype)
            l_scr[...] = jnp.zeros(l_scr.shape, dtype=l_scr.dtype)
            acc_scr[...] = jnp.zeros(acc_scr.shape, dtype=acc_scr.dtype)

    # Per-head attention update (static unroll over heads).  Q/K/V already
    # carry the MXU dtype (bf16 path) so there are no per-head casts here.
    for h in range(num_heads):
        lo = h * head_dim
        qh = q[:, lo:lo + head_dim]                                # (tq, hd)
        kh = kv[:, lo:lo + head_dim]                               # (tk, hd)
        vh = kv[:, C + lo:C + lo + head_dim]                       # (tk, hd)

        # QK^T without an explicit transpose: contract the last dims.
        s = lax.dot_general(qh, kh, (((1,), (1,)), ((), ())),
                            preferred_element_type=jnp.float32)    # (tq, tk)

        if multi_kv:
            # Online-softmax recurrence (only emitted when kv axis > 1 step).
            m_prev = m_scr[h]                                      # (tq, 1)
            m_new = jnp.maximum(m_prev, jnp.max(s, axis=-1, keepdims=True))
            alpha = jnp.exp(m_prev - m_new)
            p = jnp.exp(s - m_new)                                 # f32
            l_scr[h] = alpha * l_scr[h] + jnp.sum(p, axis=-1, keepdims=True)
            acc_scr[:, lo:lo + head_dim] = (
                alpha * acc_scr[:, lo:lo + head_dim]
                + jnp.dot(p.astype(kv.dtype), vh,
                          preferred_element_type=jnp.float32))
            m_scr[h] = m_new
        else:
            # Single kv step: plain softmax, no rescale bookkeeping.
            m = jnp.max(s, axis=-1, keepdims=True)
            p = jnp.exp(s - m)
            l = jnp.sum(p, axis=-1, keepdims=True)
            oh = jnp.dot(p.astype(kv.dtype), vh,
                         preferred_element_type=jnp.float32)       # (tq, hd)
            acc_scr[:, lo:lo + head_dim] = oh / l

    def _epilogue():
        # One full-C-contraction matmul for the output 1x1 conv, plus a single
        # bias + residual add.  Runs once per q tile.
        acc = acc_scr[...]                                         # (tq, C) f32
        acc_op = acc if mxu_dtype is None else acc.astype(mxu_dtype)
        y = (xres_ref[0].astype(jnp.float32) + bo_ref[...]
             + jnp.dot(acc_op, wo_ref[...],
                       preferred_element_type=jnp.float32))
        o_ref[0] = y.astype(o_ref.dtype)

    if multi_kv:
        @pl.when(ki == pl.num_programs(2) - 1)
        def _finalize():
            for h in range(num_heads):
                lo = h * head_dim
                acc_scr[:, lo:lo + head_dim] = (
                    acc_scr[:, lo:lo + head_dim] / l_scr[h])       # exact divide
            _epilogue()
    else:
        _epilogue()


def _pick_tile(n, target):
    """Largest multiple of 8 that divides n and is <= target; fallback n."""
    best = None
    for t in range(8, min(n, target) + 1, 8):
        if n % t == 0:
            best = t
    return best if best is not None else n


def mhsa_pallas(x_nchw, params, num_heads, *, tq=None, tk=None, tp=None,
                mxu_dtype=None, vmem_limit_bytes=48 * 1024 * 1024):
    """x_nchw: (B, C, H, W) float32. params: dict of 1x1-conv weights/biases.

    mxu_dtype: set to jnp.bfloat16 on v5e/v6e/v7x to run every matmul
    (projections, attention, out-projection) with bf16 MXU operands;
    softmax / accumulation math stays f32.
    """
    B, C, H, W = x_nchw.shape
    assert C % num_heads == 0, "in_channels must be divisible by num_heads"
    N = H * W
    head_dim = C // num_heads
    scale = head_dim ** (-0.5)

    if tq is None:
        tq = _pick_tile(N, 256)       # keeps B*(N/tq) >= 2 for v7x's 2 TCs
    if tk is None:
        # Collapse the kv axis for typical YOLO sequence lengths (no flash
        # bookkeeping / extra grid steps); keep tiling for very long N.
        tk = N if N <= 2048 else _pick_tile(N, 512)
    if tp is None:
        tp = _pick_tile(N, 512)
    assert N % tq == 0 and N % tk == 0 and N % tp == 0

    # NCHW -> [B, N, C] glue.
    x_seq = jnp.transpose(x_nchw.reshape(B, C, N), (0, 2, 1))

    # Weight prep: 1x1 convs are x @ W.T + b.  Fold the softmax scale into
    # Wq/bq, fuse Q/K/V into a single (C, 3C) weight.  Pre-cast weights to the
    # MXU dtype so in-kernel matmul operands need no per-step casts.
    w_dtype = jnp.float32 if mxu_dtype is None else mxu_dtype
    wqkv = jnp.concatenate(
        [params["wq"].T * scale, params["wk"].T, params["wv"].T],
        axis=1).astype(w_dtype)                                    # (C, 3C)
    bqkv = jnp.concatenate(
        [params["bq"] * scale, params["bk"], params["bv"]]).reshape(1, 3 * C)
    wo = params["wo"].T.astype(w_dtype)                            # (C, C)
    bo = params["bo"].reshape(1, C)

    proj_dtype = x_seq.dtype if mxu_dtype is None else mxu_dtype

    # ---- pass 1: fused QKV projection (once per pixel, NOT per kv tile) ----
    qkv_kernel = functools.partial(_qkv_proj_kernel, C=C, mxu_dtype=mxu_dtype)
    q_arr, kv_arr = pl.pallas_call(
        qkv_kernel,
        out_shape=(jax.ShapeDtypeStruct((B, N, C), proj_dtype),
                   jax.ShapeDtypeStruct((B, N, 2 * C), proj_dtype)),
        grid_spec=pltpu.PrefetchScalarGridSpec(
            num_scalar_prefetch=0,
            grid=(B, N // tp),
            in_specs=[
                pl.BlockSpec((1, tp, C), lambda b, i: (b, i, 0)),       # x tile
                pl.BlockSpec((C, 3 * C), lambda b, i: (0, 0)),          # Wqkv
                pl.BlockSpec((1, 3 * C), lambda b, i: (0, 0)),          # bqkv
            ],
            out_specs=[
                pl.BlockSpec((1, tp, C), lambda b, i: (b, i, 0)),       # Q (scaled)
                pl.BlockSpec((1, tp, 2 * C), lambda b, i: (b, i, 0)),   # [K|V]
            ]),
        compiler_params=pltpu.CompilerParams(
            dimension_semantics=("parallel", "parallel"),
            vmem_limit_bytes=vmem_limit_bytes),
    )(x_seq, wqkv, bqkv)

    # ---- pass 2: attention + out-projection + residual ---------------------
    num_kv_steps = N // tk
    flash_kernel = functools.partial(
        _flash_attn_kernel, num_heads=num_heads, head_dim=head_dim,
        mxu_dtype=mxu_dtype, multi_kv=(num_kv_steps > 1))

    out_seq = pl.pallas_call(
        flash_kernel,
        out_shape=jax.ShapeDtypeStruct((B, N, C), x_seq.dtype),
        grid_spec=pltpu.PrefetchScalarGridSpec(
            num_scalar_prefetch=0,
            grid=(B, N // tq, num_kv_steps),
            in_specs=[
                pl.BlockSpec((1, tq, C), lambda b, qi, ki: (b, qi, 0)),      # Q
                pl.BlockSpec((1, tk, 2 * C), lambda b, qi, ki: (b, ki, 0)),  # [K|V]
                pl.BlockSpec((1, tq, C), lambda b, qi, ki: (b, qi, 0)),      # residual x
                pl.BlockSpec((C, C), lambda b, qi, ki: (0, 0)),              # Wo
                pl.BlockSpec((1, C), lambda b, qi, ki: (0, 0)),              # bo
            ],
            out_specs=pl.BlockSpec((1, tq, C), lambda b, qi, ki: (b, qi, 0)),
            scratch_shapes=[
                pltpu.VMEM((num_heads, tq, 1), jnp.float32),   # running max m
                pltpu.VMEM((num_heads, tq, 1), jnp.float32),   # running sum l
                pltpu.VMEM((tq, C), jnp.float32),              # output accumulator
            ]),
        compiler_params=pltpu.CompilerParams(
            dimension_semantics=("parallel", "parallel", "arbitrary"),
            vmem_limit_bytes=vmem_limit_bytes),
    )(q_arr, kv_arr, x_seq, wo, bo)

    # [B, N, C] -> NCHW glue.
    return jnp.transpose(out_seq, (0, 2, 1)).reshape(B, C, H, W)


def mhsa_reference(x, params, num_heads):
    """Pure-JAX reference mirroring the PyTorch forward exactly."""
    B, C, H, W = x.shape
    hd = C // num_heads
    scale = hd ** (-0.5)

    def conv1x1(inp, w, b):
        return jnp.einsum("bchw,oc->bohw", inp, w) + b[None, :, None, None]

    def to_heads(t):
        return jnp.transpose(t.reshape(B, num_heads, hd, H * W), (0, 1, 3, 2))

    q = to_heads(conv1x1(x, params["wq"], params["bq"]))
    k = to_heads(conv1x1(x, params["wk"], params["bk"]))
    v = to_heads(conv1x1(x, params["wv"], params["bv"]))

    attn = jnp.einsum("bhnd,bhmd->bhnm", q, k) * scale
    attn = jax.nn.softmax(attn, axis=-1)
    out = jnp.einsum("bhnm,bhmd->bhnd", attn, v)
    out = jnp.transpose(out, (0, 1, 3, 2)).reshape(B, C, H, W)
    out = conv1x1(out, params["wo"], params["bo"])
    return out + x


if __name__ == "__main__":
    # Small deterministic example: B=2, C=8, H=W=8 (N=64), num_heads=2 (hd=4).
    B, C, H, W = 2, 8, 8, 8
    num_heads = 2

    key = jax.random.PRNGKey(0)
    keys = jax.random.split(key, 9)
    fan = 1.0 / math.sqrt(C)  # PyTorch Conv2d default-ish uniform scale
    params = {
        "wq": jax.random.uniform(keys[0], (C, C), jnp.float32, -fan, fan),
        "bq": jax.random.uniform(keys[1], (C,), jnp.float32, -fan, fan),
        "wk": jax.random.uniform(keys[2], (C, C), jnp.float32, -fan, fan),
        "bk": jax.random.uniform(keys[3], (C,), jnp.float32, -fan, fan),
        "wv": jax.random.uniform(keys[4], (C, C), jnp.float32, -fan, fan),
        "bv": jax.random.uniform(keys[5], (C,), jnp.float32, -fan, fan),
        "wo": jax.random.uniform(keys[6], (C, C), jnp.float32, -fan, fan),
        "bo": jax.random.uniform(keys[7], (C,), jnp.float32, -fan, fan),
    }
    x = jax.random.normal(keys[8], (B, C, H, W), jnp.float32)

    ref = mhsa_reference(x, params, num_heads)

    # (1) f32, multi-kv flash path (tq=32, tk=16 -> grid (2, 2, 4)): exercises
    # the online-softmax recurrence and the exact-division finalize.
    out = mhsa_pallas(x, params, num_heads, tq=32, tk=16)
    out = jax.block_until_ready(out)
    assert out.shape == (B, C, H, W)
    assert jnp.allclose(out, ref, atol=2e-3, rtol=2e-3), (
        float(jnp.max(jnp.abs(out - ref))))

    # (2) bf16 MXU operands everywhere, default tiles (tk = N -> single kv
    # step, the typical YOLO / v5e-v6e configuration).
    out_bf16 = mhsa_pallas(x, params, num_heads, mxu_dtype=jnp.bfloat16)
    out_bf16 = jax.block_until_ready(out_bf16)
    assert jnp.allclose(out_bf16, ref, atol=3e-2, rtol=3e-2), (
        float(jnp.max(jnp.abs(out_bf16 - ref))))

    # (3) bf16 + multi-kv flash path (large-N configuration).
    out_bf16_flash = mhsa_pallas(x, params, num_heads, tq=32, tk=16,
                                 mxu_dtype=jnp.bfloat16)
    out_bf16_flash = jax.block_until_ready(out_bf16_flash)
    assert jnp.allclose(out_bf16_flash, ref, atol=3e-2, rtol=3e-2), (
        float(jnp.max(jnp.abs(out_bf16_flash - ref))))

    print("KERNEL_OK")
</pallas_src>

<mosaic_0001>
module attributes {stable_mosaic.version = 11 : i64} {
  func.func @_qkv_proj_kernel(%arg0: i32, %arg1: i32, %arg2: memref<1x64x8xf32, #tpu.memory_space<vmem>>, %arg3: memref<8x24xf32, #tpu.memory_space<vmem>>, %arg4: memref<1x24xf32, #tpu.memory_space<vmem>>, %arg5: memref<1x64x8xf32, #tpu.memory_space<vmem>>, %arg6: memref<1x64x16xf32, #tpu.memory_space<vmem>>) attributes {dimension_semantics = [#tpu.dimension_semantics<parallel>, #tpu.dimension_semantics<parallel>], iteration_bounds = array<i64: 2, 1>, scalar_prefetch = 0 : i64, scratch_operands = 0 : i64, tpu.core_type = #tpu.core_type<tc>, window_params = [{transform_indices = @transform_0, window_bounds = array<i64: 1, 64, 8>}, {pipeline_mode = #tpu.pipeline_mode<synchronous>, transform_indices = @transform_1, window_bounds = array<i64: 8, 24>}, {pipeline_mode = #tpu.pipeline_mode<synchronous>, transform_indices = @transform_2, window_bounds = array<i64: 1, 24>}, {transform_indices = @transform_3, window_bounds = array<i64: 1, 64, 8>}, {transform_indices = @transform_4, window_bounds = array<i64: 1, 64, 16>}]} {
    %c0 = arith.constant 0 : index
    %c0_0 = arith.constant 0 : index
    %c0_1 = arith.constant 0 : index
    %0 = vector.load %arg2[%c0, %c0_0, %c0_1] : memref<1x64x8xf32, #tpu.memory_space<vmem>>, vector<1x64x8xf32>
    %1 = vector.shape_cast %0 : vector<1x64x8xf32> to vector<64x8xf32>
    %c0_2 = arith.constant 0 : index
    %c0_3 = arith.constant 0 : index
    %2 = vector.load %arg3[%c0_2, %c0_3] : memref<8x24xf32, #tpu.memory_space<vmem>>, vector<8x24xf32>
    %cst = arith.constant dense<0.000000e+00> : vector<64x24xf32>
    %3 = tpu.matmul %1, %2, %cst {dimension_numbers = #tpu.dot_dimension_numbers<[1], [0], [0], [1], [0, 0, 1, 1], [], []>} : vector<64x8xf32>, vector<8x24xf32>, vector<64x24xf32> -> vector<64x24xf32>
    %c0_4 = arith.constant 0 : index
    %c0_5 = arith.constant 0 : index
    %4 = vector.load %arg4[%c0_4, %c0_5] : memref<1x24xf32, #tpu.memory_space<vmem>>, vector<1x24xf32>
    %5 = vector.broadcast %4 : vector<1x24xf32> to vector<64x24xf32>
    %6 = arith.addf %3, %5 : vector<64x24xf32>
    %7 = vector.extract_strided_slice %6 {offsets = [0, 0], sizes = [64, 8], strides = [1, 1]} : vector<64x24xf32> to vector<64x8xf32>
    %c0_6 = arith.constant 0 : index
    %c0_7 = arith.constant 0 : index
    %c0_8 = arith.constant 0 : index
    %8 = vector.load %arg5[%c0_6, %c0_7, %c0_8] : memref<1x64x8xf32, #tpu.memory_space<vmem>>, vector<1x64x8xf32>
    %9 = vector.shape_cast %8 : vector<1x64x8xf32> to vector<64x8xf32>
    %10 = vector.shape_cast %7 : vector<64x8xf32> to vector<1x64x8xf32>
    tpu.vector_store %arg5[%c0_6, %c0_7, %c0_8], %10 {strides = array<i32>} : memref<1x64x8xf32, #tpu.memory_space<vmem>>, vector<1x64x8xf32>,
    %11 = vector.extract_strided_slice %6 {offsets = [0, 8], sizes = [64, 16], strides = [1, 1]} : vector<64x24xf32> to vector<64x16xf32>
    %c0_9 = arith.constant 0 : index
    %c0_10 = arith.constant 0 : index
    %c0_11 = arith.constant 0 : index
    %12 = vector.load %arg6[%c0_9, %c0_10, %c0_11] : memref<1x64x16xf32, #tpu.memory_space<vmem>>, vector<1x64x16xf32>
    %13 = vector.shape_cast %12 : vector<1x64x16xf32> to vector<64x16xf32>
    %14 = vector.shape_cast %11 : vector<64x16xf32> to vector<1x64x16xf32>
    tpu.vector_store %arg6[%c0_9, %c0_10, %c0_11], %14 {strides = array<i32>} : memref<1x64x16xf32, #tpu.memory_space<vmem>>, vector<1x64x16xf32>,
    return
  }
  func.func @transform_0(%arg0: i32, %arg1: i32) -> (i32, i32, i32) {
    %c0_i32 = arith.constant 0 : i32
    %c0_i32_0 = arith.constant 0 : i32
    return %arg0, %arg1, %c0_i32 : i32, i32, i32
  }
  func.func @transform_1(%arg0: i32, %arg1: i32) -> (i32, i32) {
    %c0_i32 = arith.constant 0 : i32
    %c0_i32_0 = arith.constant 0 : i32
    %c0_i32_1 = arith.constant 0 : i32
    return %c0_i32, %c0_i32_0 : i32, i32
  }
  func.func @transform_2(%arg0: i32, %arg1: i32) -> (i32, i32) {
    %c0_i32 = arith.constant 0 : i32
    %c0_i32_0 = arith.constant 0 : i32
    %c0_i32_1 = arith.constant 0 : i32
    return %c0_i32, %c0_i32_0 : i32, i32
  }
  func.func @transform_3(%arg0: i32, %arg1: i32) -> (i32, i32, i32) {
    %c0_i32 = arith.constant 0 : i32
    %c0_i32_0 = arith.constant 0 : i32
    return %arg0, %arg1, %c0_i32 : i32, i32, i32
  }
  func.func @transform_4(%arg0: i32, %arg1: i32) -> (i32, i32, i32) {
    %c0_i32 = arith.constant 0 : i32
    %c0_i32_0 = arith.constant 0 : i32
    return %arg0, %arg1, %c0_i32 : i32, i32, i32
  }
}

</mosaic_0001>

<bundles_post_ra>
// kernel: tpu_custom_call.1
= control target key start
LH: loop header
LB: loop body
LE: loop exit
PB: predicated region body
PF: predicated region fallthrough
CT: control target
= control target key end

     0   :  { %s718_s15 = smov 0   ;;  %s720_s16 = smov 0   ;;  %s789_s0 = inlined_call_operand.vmem [shape: f32[2,64,8], index: 0, kind: input, shape index: {}]   ;;  %s790_s1 = inlined_call_operand.vmem [shape: f32[8,24], index: 1, kind: input, shape index: {}]   ;;  %s791_s2 = inlined_call_operand.vmem [shape: f32[1,24], index: 2, kind: input, shape index: {}]   ;;  %s792_s3 = inlined_call_operand.vmem [shape: f32[2,64,8], index: 3, kind: output, shape index: {0}]   ;;  %s793_s4 = inlined_call_operand.vmem [shape: f32[2,64,16], index: 4, kind: output, shape index: {1}]  }
   0x1   :  { %s722_s17 = smov 0  }
   0x2 LB: > { %s27_s18 = sadd.s32 1, %s686_s16  ;;  %p597_p0 = scmp.ge.s32.totalorder %s690_s17, 1  ;;  %s690_s17 = sphi %s722_s17, %s15_s17   ;;  %s686_s16 = sphi %s720_s16, %s795_s16   ;;  %s682_s15 = sphi %s718_s15, %s794_s15  }
   0x3   : > { %p29_p1 = scmp.ge.s32.totalorder %s27_s18, 2  ;;  %p188_p2 = scmp.lt.s32.totalorder %s690_s17, 3 }
   0x5   : > { %s797_s18 = smov (%p29_p1, %s27_s18), 0  ;;  %p189_p3 = pnand %p597_p0, %p188_p2 }
   0x6   : > { %v269_v0 = vld [vmem:[%s790_s1] sm:$0xff] (!%p189_p3)  ;;  %p232_p4 = scmp.lt.s32.totalorder (!%p189_p3), %s682_s15, 1  ;;  %vm277_vm0 = vcmask (!%p189_p3), 64512   ;;  %s692_s30 = smov (!%p189_p3), 120   ;;  %vm447_vm1 = vcmask (!%p189_p3), 130048  }
   0x7   : > { %192 = sbr.rel (%p189_p3) target bundleno = 362 (0x16a), region = 32  ;;  %627 = vmatprep.subr.mxu0 (!%p189_p3), %v269_v0  ;;  %641 = vmatprep.subr.mxu1 (!%p189_p3), %v269_v0  ;;  %v604_v9 = vld [vmem:[%s791_s2] ss:$0 sm:$0xff] (!%p189_p3) }
   0x8   : > { %628 = vmatpush3.msra.mxu0 (!%p189_p3), %v269_v0  ;;  %642 = vmatpush3.msra.mxu1 (!%p189_p3), %v269_v0 }
   0xe   : > { %s799_s15 = smov (!%p232_p4, %s682_s15), 1 }
   0xf   : > { %s739_s21 = sshll.u32 %s799_s15, 6 }
  0x10   : > { %s239_s24 = scalar_lea.vmem %s789_s0, %s739_s21  ;;  %s249_s29 = scalar_lea.vmem %s792_s3, %s739_s21 }
  0x11   : > { %v261_v1 = vld [vmem:[%s239_s24] sm:$0xff]  ;;  %v262_v3 = vld [vmem:[%s239_s24 + $0x8] sm:$0xff]  ;;  %v263_v5 = vld [vmem:[%s239_s24 + $0x10] sm:$0xff]  ;;  %s259_s7 = scalar_lea.vmem %s793_s4, %s739_s21 }
  0x12   : > { %v265_v2 = vld [vmem:[%s239_s24 + $0x20] sm:$0xff]  ;;  %629 = vmatprep.mubr.msk.f32.mxu0 %vm277_vm0, %v261_v1  ;;  %v266_v4 = vld [vmem:[%s239_s24 + $0x28] sm:$0xff]  ;;  %v267_v6 = vld [vmem:[%s239_s24 + $0x30] sm:$0xff] }
  0x13   : > { %635 = vmatprep.mubr.msk.f32.mxu1 %vm277_vm0, %v265_v2  ;;  %630 = vmatmul.mubr.msk.f32.vlgmr.msra.gmra.mrb[0].mxu0 %vm277_vm0, %v262_v3  ;;  %v264_v7 = vld [vmem:[%s239_s24 + $0x18] sm:$0xff] }
  0x14   : > { %636 = vmatmul.mubr.msk.f32.vlgmr.msra.gmra.mrb[0].mxu1 %vm277_vm0, %v266_v4  ;;  %632 = vmatprep.mubr.msk.f32.mxu0 %vm277_vm0, %v263_v5  ;;  %v268_v8 = vld [vmem:[%s239_s24 + $0x38] sm:$0xff] }
  0x15   : > { %638 = vmatprep.mubr.msk.f32.mxu1 %vm277_vm0, %v267_v6 }
  0x17   : > { %633 = vmatmul.mubr.msk.f32.gmra.mrb[2].mxu0 %vm277_vm0, %v264_v7 }
  0x18   : > { %639 = vmatmul.mubr.msk.f32.gmra.mrb[2].mxu1 %vm277_vm0, %v268_v8 }
  0xe6   : > { %v631_v10 = vpop.f32.mrb[0].mxu0 }
  0xe7   : > { %v637_v11 = vpop.f32.mrb[0].mxu1  ;;  %v374_v12 = vadd.f32 %v631_v10, %v604_v9  ;;  %v368_v14 = vpop.f32.mrb[1].mxu0 }
  0xe8   : > { %v394_v13 = vadd.f32 %v637_v11, %v604_v9  ;;  %v388_v15 = vpop.f32.mrb[1].mxu1  ;;  %v369_v16 = vadd.f32 %v604_v9, %v368_v14 }
  0xe9   : > { %v389_v17 = vadd.f32 %v604_v9, %v388_v15  ;;  %408 = vst.msk [vmem:[%s249_s29 + $0x8] sm:$0xff] %vm277_vm0, %v374_v12  ;;  %425 = vrot.lane.b32.xlu0 %v374_v12, %s692_s30 }
  0xea   : > { %412 = vst.msk [vmem:[%s249_s29 + $0x28] sm:$0xff] %vm277_vm0, %v394_v13  ;;  %433 = vrot.lane.b32.xlu1 %v394_v13, %s692_s30  ;;  %407 = vst.msk [vmem:[%s249_s29] sm:$0xff] %vm277_vm0, %v369_v16  ;;  %v634_v18 = vpop.f32.mrb[2].mxu0 }
  0xeb   : > { %411 = vst.msk [vmem:[%s249_s29 + $0x20] sm:$0xff] %vm277_vm0, %v389_v17  ;;  %v640_v19 = vpop.f32.mrb[2].mxu1  ;;  %v384_v20 = vadd.f32 %v634_v18, %v604_v9  ;;  %v378_v21 = vpop.f32.mrb[3].mxu0 }
  0xec   : > { %v404_v22 = vadd.f32 %v640_v19, %v604_v9  ;;  %v398_v23 = vpop.f32.mrb[3].mxu1  ;;  %v379_v24 = vadd.f32 %v604_v9, %v378_v21 }
  0xed   : > { %v399_v25 = vadd.f32 %v604_v9, %v398_v23  ;;  %410 = vst.msk [vmem:[%s249_s29 + $0x18] sm:$0xff] %vm277_vm0, %v384_v20  ;;  %423 = vrot.lane.b32.xlu0 %v369_v16, %s692_s30 }
  0xee   : > { %429 = vrot.lane.b32.xlu1 %v384_v20, %s692_s30  ;;  %414 = vst.msk [vmem:[%s249_s29 + $0x38] sm:$0xff] %vm277_vm0, %v404_v22  ;;  %409 = vst.msk [vmem:[%s249_s29 + $0x10] sm:$0xff] %vm277_vm0, %v379_v24 }
  0xef   : > { %413 = vst.msk [vmem:[%s249_s29 + $0x30] sm:$0xff] %vm277_vm0, %v399_v25 }
  0xf1   : > { %431 = vrot.lane.b32.xlu0 %v389_v17, %s692_s30 }
  0xf2   : > { %427 = vrot.lane.b32.xlu1 %v379_v24, %s692_s30 }
  0xf5   : > { %435 = vrot.lane.b32.xlu0 %v399_v25, %s692_s30 }
  0xf6   : > { %437 = vrot.lane.b32.xlu1 %v404_v22, %s692_s30 }
 0x15b   : > { %v426_v27 = vpop.permute.xlu0 %425 }
 0x15c   : > { %v434_v26 = vpop.permute.xlu1 %433  ;;  %449 = vst.msk [vmem:[%s259_s7 + $0x8] sm:$0xff] %vm447_vm1, %v426_v27 }
 0x15d   : > { %453 = vst.msk [vmem:[%s259_s7 + $0x28] sm:$0xff] %vm447_vm1, %v434_v26 }
 0x15f   : > { %v424_v29 = vpop.permute.xlu0 %423 }
 0x160   : > { %v430_v28 = vpop.permute.xlu1 %429  ;;  %448 = vst.msk [vmem:[%s259_s7] sm:$0xff] %vm447_vm1, %v424_v29 }
 0x161   : > { %451 = vst.msk [vmem:[%s259_s7 + $0x18] sm:$0xff] %vm447_vm1, %v430_v28 }
 0x163   : > { %v432_v31 = vpop.permute.xlu0 %431 }
 0x164   : > { %v428_v30 = vpop.permute.xlu1 %427  ;;  %452 = vst.msk [vmem:[%s259_s7 + $0x20] sm:$0xff] %vm447_vm1, %v432_v31 }
 0x165   : > { %450 = vst.msk [vmem:[%s259_s7 + $0x10] sm:$0xff] %vm447_vm1, %v428_v30 }
 0x167   : > { %v436_v33 = vpop.permute.xlu0 %435 }
 0x168   : > { %v438_v32 = vpop.permute.xlu1 %437  ;;  %454 = vst.msk [vmem:[%s259_s7 + $0x30] sm:$0xff] %vm447_vm1, %v436_v33 }
 0x169   : > { %455 = vst.msk [vmem:[%s259_s7 + $0x38] sm:$0xff] %vm447_vm1, %v438_v32 }
 0x16a PF: > { %s15_s17 = sadd.s32 1, %s690_s17   ;;  %s794_s15 = smov %s686_s16 }
 0x16b   : > { %p12_p5 = scmp.ge.s32.totalorder %s15_s17, 4   ;;  %s795_s16 = smov %s797_s18 }
 0x16d   :  { %14 = sbr.rel (!%p12_p5) target bundleno = 2 (0x2), region = 74 }

</bundles_post_ra>
